<compile_context>
chip_gen: v7x
topology: tpu7x:2x2x1
jax: 0.10.0
libtpu: 0.0.40
codegen_flags: <defaults>
</compile_context>

<pallas_src>
import jax
import jax.numpy as jnp
from jax.experimental import pallas as pl
from jax.experimental.pallas import tpu as pltpu


def _upsample_conv_kernel(x_ref, w_ref, b_ref, e_ref, o_ref):
    """x_ref: (1, C, th, FW)      folded input tile (NCHW rows folded by F)
       w_ref: (C2, C)             1x1 conv weight (SMEM scalar table)
       b_ref: (C2,)               1x1 conv bias   (SMEM scalar table)
       e_ref: (FW, 4*FW)          0/1 expansion matrix (VMEM, resident)
       o_ref: (1, C2, th, 4*FW)   folded output tile = conv(upsample(x))
    """
    _, C, th, FW = x_ref.shape
    C2 = o_ref.shape[1]

    # 1x1 conv on the small (pre-upsample) map.  Input channels on the outer
    # loop so each x[c] tile is loaded exactly once (vld is the scarce slot).
    accs = [jnp.zeros((th, FW), dtype=jnp.float32) for _ in range(C2)]
    for c in range(C):
        xc = x_ref[0, c, :, :].astype(jnp.float32)
        for o in range(C2):
            accs[o] = accs[o] + xc * w_ref[o, c]
    accs = [accs[o] + b_ref[o] for o in range(C2)]

    # Exact nearest 2x upsample: one batched matmul with the resident 0/1
    # expansion matrix, emitting directly in the lane-folded layout
    # (th, 4*FW) which is bit-identical to (2*F*th, 2*W) row-major.
    stacked = jnp.concatenate(accs, axis=0)                           # (C2*th, FW)
    up = jnp.dot(stacked, e_ref[...],
                 preferred_element_type=jnp.float32)                  # (C2*th, 4FW)
    for o in range(C2):
        o_ref[0, o, :, :] = up[o * th:(o + 1) * th, :].astype(o_ref.dtype)


def _vmem_budgets():
    """(scoped vmem limit, tile budget) in bytes, per TPU generation."""
    cap = 64 * 1024 * 1024                       # conservative fallback (v7x)
    try:
        cap = int(pltpu.get_tpu_info().vmem_capacity_bytes)
    except Exception:
        pass
    vmem_limit = min(cap * 3 // 4, 100 * 1024 * 1024)   # ~96 MiB v5e/v6e, 48 MiB v7x
    tile_budget = min(int(cap * 0.45), 64 * 1024 * 1024)
    return vmem_limit, tile_budget


def _pick_fold(H, W):
    """Smallest power-of-two row fold F (dividing H) so the folded output
    lane width 4*F*W reaches 128 (unmasked, lane-dense stores)."""
    F = 1
    while 4 * F * W < 128 and H % (2 * F) == 0:
        F *= 2
    return F


def _pick_row_tile(H_f, C, C2, FW, itemsize, budget, min_row_blocks):
    """Largest folded row tile th that divides H_f, is aligned to the packed
    sublane count for the dtype (or == H_f), fits double-buffered tiles plus
    f32 intermediates plus the resident expansion matrix in the budget, and
    (if possible) yields >= min_row_blocks grid blocks."""
    sub = {4: 8, 2: 16, 1: 32}.get(itemsize, 8)

    def tile_bytes(th):
        x_tile = C * th * FW * itemsize
        o_tile = C2 * th * 4 * FW * itemsize
        f32_tmp = (2 * C2 * th * FW + C2 * th * 4 * FW) * 4    # accs+stacked+up
        e_bytes = 2 * FW * 4 * FW * 4                          # resident E (x2 buf)
        return 2 * (x_tile + o_tile) + f32_tmp + e_bytes

    cands = [t for t in range(1, H_f + 1)
             if H_f % t == 0 and (t == H_f or t % sub == 0)]
    cands.sort(reverse=True)                      # prefer full-height tiles
    for t in cands:
        if H_f // t >= min_row_blocks and tile_bytes(t) <= budget:
            return t
    for t in cands:                               # relax the >=2-block wish
        if tile_bytes(t) <= budget:
            return t
    return cands[-1]                              # best effort (smallest valid)


def upsampling_forward(x_nchw, r_nchw, weight, bias):
    """Mirrors UpSampling.forward(x, r) in NCHW.

    x_nchw : (N, C, H, W)
    r_nchw : (N, Cr, 2H, 2W)
    weight : (C//2, C, 1, 1)   PyTorch Conv2d weight layout
    bias   : (C//2,)
    returns: (N, C//2 + Cr, 2H, 2W)
    """
    N, C, H, W = x_nchw.shape
    C2 = weight.shape[0]
    out_dtype = x_nchw.dtype
    itemsize = jnp.dtype(out_dtype).itemsize

    # Row folding (free reshape: preserves row-major contiguity).
    F = _pick_fold(H, W)
    H_f, FW = H // F, F * W
    x_f = x_nchw.reshape(N, C, H_f, FW)

    # 1x1-conv parameters as f32 scalar tables (SMEM).
    w = weight[:, :, 0, 0].astype(jnp.float32)               # (C2, C)
    b = bias.astype(jnp.float32)                             # (C2,)

    # Combined column-expansion + row-duplication matrix E (FW, 4*FW):
    # (acc @ E)[s, f'*2W + j] == acc[s, (f'//2)*W + j//2]  -> exact nearest 2x.
    ki = jnp.arange(FW, dtype=jnp.int32)[:, None]
    mi = jnp.arange(4 * FW, dtype=jnp.int32)[None, :]
    e_mat = (((mi // (2 * W)) // 2 == ki // W)
             & ((mi % (2 * W)) // 2 == ki % W)).astype(jnp.float32)

    vmem_limit, tile_budget = _vmem_budgets()
    min_blocks = 2 if N == 1 else 1   # keep both v7x TensorCores busy
    th = _pick_row_tile(H_f, C, C2, FW, itemsize, tile_budget, min_blocks)
    grid = (N, H_f // th)

    y_f = pl.pallas_call(
        _upsample_conv_kernel,
        out_shape=jax.ShapeDtypeStruct((N, C2, H_f, 4 * FW), out_dtype),
        grid_spec=pltpu.PrefetchScalarGridSpec(
            num_scalar_prefetch=0,
            grid=grid,
            in_specs=[
                pl.BlockSpec((1, C, th, FW), lambda n, h: (n, 0, h, 0)),
                pl.BlockSpec(memory_space=pltpu.MemorySpace.SMEM),     # weight
                pl.BlockSpec(memory_space=pltpu.MemorySpace.SMEM),     # bias
                pl.BlockSpec((FW, 4 * FW), lambda n, h: (0, 0)),       # E resident
            ],
            out_specs=pl.BlockSpec((1, C2, th, 4 * FW),
                                   lambda n, h: (n, 0, h, 0)),
        ),
        compiler_params=pltpu.CompilerParams(
            dimension_semantics=("parallel", "parallel"),
            vmem_limit_bytes=vmem_limit,
        ),
    )(x_f, w, b, e_mat)

    # Un-fold (free: identical row-major memory) and concat the skip tensor in
    # the wrapper, where both halves are contiguous NCHW channel blocks.
    # (No forced cast of r: like torch.cat, dtype promotion applies if needed.)
    y = y_f.reshape(N, C2, 2 * H, 2 * W)
    return jnp.concatenate((y, r_nchw), axis=1)


def _reference(x_nchw, r_nchw, weight, bias):
    """Pure-JAX reference of the PyTorch forward (for correctness check)."""
    up = jnp.repeat(jnp.repeat(x_nchw, 2, axis=2), 2, axis=3)      # nearest x2
    y = jnp.einsum("nchw,oc->nohw", up, weight[:, :, 0, 0]) \
        + bias[None, :, None, None]
    return jnp.concatenate((y, r_nchw), axis=1)


if __name__ == "__main__":
    key = jax.random.PRNGKey(0)
    kx, kr, kw, kb = jax.random.split(key, 4)

    N, C, H, W = 2, 4, 16, 16          # module param C=4 -> conv 4 -> 2
    C2 = C // 2
    Cr = C2                            # skip connection channels (U-Net style)

    x = jax.random.normal(kx, (N, C, H, W), dtype=jnp.float32)
    r = jax.random.normal(kr, (N, Cr, 2 * H, 2 * W), dtype=jnp.float32)

    # deterministic synthetic Conv2d(C, C//2, 1, 1) parameters
    weight = jax.random.normal(kw, (C2, C, 1, 1), dtype=jnp.float32) * 0.1
    bias = jax.random.normal(kb, (C2,), dtype=jnp.float32) * 0.1

    out = jax.block_until_ready(upsampling_forward(x, r, weight, bias))

    ref = _reference(x, r, weight, bias)
    assert out.shape == (N, C2 + Cr, 2 * H, 2 * W), out.shape
    assert jnp.allclose(out, ref, atol=1e-5, rtol=1e-5), float(
        jnp.max(jnp.abs(out - ref)))

    print("KERNEL_OK")
</pallas_src>

<mosaic_0001>
module attributes {stable_mosaic.version = 11 : i64} {
  func.func @_upsample_conv_kernel(%arg0: i32, %arg1: i32, %arg2: memref<1x4x8x32xf32, #tpu.memory_space<vmem>>, %arg3: memref<2x4xf32, #tpu.memory_space<smem>>, %arg4: memref<2xf32, #tpu.memory_space<smem>>, %arg5: memref<32x128xf32, #tpu.memory_space<vmem>>, %arg6: memref<1x2x8x128xf32, #tpu.memory_space<vmem>>) attributes {dimension_semantics = [#tpu.dimension_semantics<parallel>, #tpu.dimension_semantics<parallel>], iteration_bounds = array<i64: 2, 1>, scalar_prefetch = 0 : i64, scratch_operands = 0 : i64, tpu.core_type = #tpu.core_type<tc>, window_params = [{transform_indices = @transform_0, window_bounds = array<i64: 1, 4, 8, 32>}, {transform_indices = @transform_1, window_bounds = array<i64: 2, 4>}, {transform_indices = @transform_2, window_bounds = array<i64: 2>}, {pipeline_mode = #tpu.pipeline_mode<synchronous>, transform_indices = @transform_3, window_bounds = array<i64: 32, 128>}, {transform_indices = @transform_4, window_bounds = array<i64: 1, 2, 8, 128>}]} {
    %cst = arith.constant 0.000000e+00 : f32
    %0 = vector.broadcast %cst : f32 to vector<8x32xf32>
    %cst_0 = arith.constant 0.000000e+00 : f32
    %1 = vector.broadcast %cst_0 : f32 to vector<8x32xf32>
    %c0 = arith.constant 0 : index
    %c0_1 = arith.constant 0 : index
    %c0_2 = arith.constant 0 : index
    %c0_3 = arith.constant 0 : index
    %2 = vector.load %arg2[%c0, %c0_1, %c0_2, %c0_3] : memref<1x4x8x32xf32, #tpu.memory_space<vmem>>, vector<1x1x8x32xf32>
    %3 = vector.shape_cast %2 : vector<1x1x8x32xf32> to vector<8x32xf32>
    %c0_4 = arith.constant 0 : index
    %c0_5 = arith.constant 0 : index
    %4 = memref.load %arg3[%c0_4, %c0_5] : memref<2x4xf32, #tpu.memory_space<smem>>
    %5 = vector.broadcast %4 : f32 to vector<8x32xf32>
    %6 = arith.mulf %3, %5 : vector<8x32xf32>
    %7 = arith.addf %0, %6 : vector<8x32xf32>
    %c1 = arith.constant 1 : index
    %c0_6 = arith.constant 0 : index
    %8 = memref.load %arg3[%c1, %c0_6] : memref<2x4xf32, #tpu.memory_space<smem>>
    %9 = vector.broadcast %8 : f32 to vector<8x32xf32>
    %10 = arith.mulf %3, %9 : vector<8x32xf32>
    %11 = arith.addf %1, %10 : vector<8x32xf32>
    %c0_7 = arith.constant 0 : index
    %c1_8 = arith.constant 1 : index
    %c0_9 = arith.constant 0 : index
    %c0_10 = arith.constant 0 : index
    %12 = vector.load %arg2[%c0_7, %c1_8, %c0_9, %c0_10] : memref<1x4x8x32xf32, #tpu.memory_space<vmem>>, vector<1x1x8x32xf32>
    %13 = vector.shape_cast %12 : vector<1x1x8x32xf32> to vector<8x32xf32>
    %c0_11 = arith.constant 0 : index
    %c1_12 = arith.constant 1 : index
    %14 = memref.load %arg3[%c0_11, %c1_12] : memref<2x4xf32, #tpu.memory_space<smem>>
    %15 = vector.broadcast %14 : f32 to vector<8x32xf32>
    %16 = arith.mulf %13, %15 : vector<8x32xf32>
    %17 = arith.addf %7, %16 : vector<8x32xf32>
    %c1_13 = arith.constant 1 : index
    %c1_14 = arith.constant 1 : index
    %18 = memref.load %arg3[%c1_13, %c1_14] : memref<2x4xf32, #tpu.memory_space<smem>>
    %19 = vector.broadcast %18 : f32 to vector<8x32xf32>
    %20 = arith.mulf %13, %19 : vector<8x32xf32>
    %21 = arith.addf %11, %20 : vector<8x32xf32>
    %c0_15 = arith.constant 0 : index
    %c2 = arith.constant 2 : index
    %c0_16 = arith.constant 0 : index
    %c0_17 = arith.constant 0 : index
    %22 = vector.load %arg2[%c0_15, %c2, %c0_16, %c0_17] : memref<1x4x8x32xf32, #tpu.memory_space<vmem>>, vector<1x1x8x32xf32>
    %23 = vector.shape_cast %22 : vector<1x1x8x32xf32> to vector<8x32xf32>
    %c0_18 = arith.constant 0 : index
    %c2_19 = arith.constant 2 : index
    %24 = memref.load %arg3[%c0_18, %c2_19] : memref<2x4xf32, #tpu.memory_space<smem>>
    %25 = vector.broadcast %24 : f32 to vector<8x32xf32>
    %26 = arith.mulf %23, %25 : vector<8x32xf32>
    %27 = arith.addf %17, %26 : vector<8x32xf32>
    %c1_20 = arith.constant 1 : index
    %c2_21 = arith.constant 2 : index
    %28 = memref.load %arg3[%c1_20, %c2_21] : memref<2x4xf32, #tpu.memory_space<smem>>
    %29 = vector.broadcast %28 : f32 to vector<8x32xf32>
    %30 = arith.mulf %23, %29 : vector<8x32xf32>
    %31 = arith.addf %21, %30 : vector<8x32xf32>
    %c0_22 = arith.constant 0 : index
    %c3 = arith.constant 3 : index
    %c0_23 = arith.constant 0 : index
    %c0_24 = arith.constant 0 : index
    %32 = vector.load %arg2[%c0_22, %c3, %c0_23, %c0_24] : memref<1x4x8x32xf32, #tpu.memory_space<vmem>>, vector<1x1x8x32xf32>
    %33 = vector.shape_cast %32 : vector<1x1x8x32xf32> to vector<8x32xf32>
    %c0_25 = arith.constant 0 : index
    %c3_26 = arith.constant 3 : index
    %34 = memref.load %arg3[%c0_25, %c3_26] : memref<2x4xf32, #tpu.memory_space<smem>>
    %35 = vector.broadcast %34 : f32 to vector<8x32xf32>
    %36 = arith.mulf %33, %35 : vector<8x32xf32>
    %37 = arith.addf %27, %36 : vector<8x32xf32>
    %c1_27 = arith.constant 1 : index
    %c3_28 = arith.constant 3 : index
    %38 = memref.load %arg3[%c1_27, %c3_28] : memref<2x4xf32, #tpu.memory_space<smem>>
    %39 = vector.broadcast %38 : f32 to vector<8x32xf32>
    %40 = arith.mulf %33, %39 : vector<8x32xf32>
    %41 = arith.addf %31, %40 : vector<8x32xf32>
    %c0_29 = arith.constant 0 : index
    %42 = memref.load %arg4[%c0_29] : memref<2xf32, #tpu.memory_space<smem>>
    %43 = vector.broadcast %42 : f32 to vector<8x32xf32>
    %44 = arith.addf %37, %43 : vector<8x32xf32>
    %c1_30 = arith.constant 1 : index
    %45 = memref.load %arg4[%c1_30] : memref<2xf32, #tpu.memory_space<smem>>
    %46 = vector.broadcast %45 : f32 to vector<8x32xf32>
    %47 = arith.addf %41, %46 : vector<8x32xf32>
    %48 = tpu.concatenate %44, %47 in 0 : vector<8x32xf32>, vector<8x32xf32> -> vector<16x32xf32>
    %c0_31 = arith.constant 0 : index
    %c0_32 = arith.constant 0 : index
    %49 = vector.load %arg5[%c0_31, %c0_32] : memref<32x128xf32, #tpu.memory_space<vmem>>, vector<32x128xf32>
    %cst_33 = arith.constant dense<0.000000e+00> : vector<16x128xf32>
    %50 = tpu.matmul %48, %49, %cst_33 {dimension_numbers = #tpu.dot_dimension_numbers<[1], [0], [0], [1], [0, 0, 1, 1], [], []>} : vector<16x32xf32>, vector<32x128xf32>, vector<16x128xf32> -> vector<16x128xf32>
    %51 = vector.extract_strided_slice %50 {offsets = [0, 0], sizes = [8, 128], strides = [1, 1]} : vector<16x128xf32> to vector<8x128xf32>
    %c0_34 = arith.constant 0 : index
    %c0_35 = arith.constant 0 : index
    %c0_36 = arith.constant 0 : index
    %c0_37 = arith.constant 0 : index
    %52 = vector.load %arg6[%c0_34, %c0_35, %c0_36, %c0_37] : memref<1x2x8x128xf32, #tpu.memory_space<vmem>>, vector<1x1x8x128xf32>
    %53 = vector.shape_cast %52 : vector<1x1x8x128xf32> to vector<8x128xf32>
    %54 = vector.shape_cast %51 : vector<8x128xf32> to vector<1x1x8x128xf32>
    tpu.vector_store %arg6[%c0_34, %c0_35, %c0_36, %c0_37], %54 {strides = array<i32>} : memref<1x2x8x128xf32, #tpu.memory_space<vmem>>, vector<1x1x8x128xf32>,
    %55 = vector.extract_strided_slice %50 {offsets = [8, 0], sizes = [8, 128], strides = [1, 1]} : vector<16x128xf32> to vector<8x128xf32>
    %c0_38 = arith.constant 0 : index
    %c1_39 = arith.constant 1 : index
    %c0_40 = arith.constant 0 : index
    %c0_41 = arith.constant 0 : index
    %56 = vector.load %arg6[%c0_38, %c1_39, %c0_40, %c0_41] : memref<1x2x8x128xf32, #tpu.memory_space<vmem>>, vector<1x1x8x128xf32>
    %57 = vector.shape_cast %56 : vector<1x1x8x128xf32> to vector<8x128xf32>
    %58 = vector.shape_cast %55 : vector<8x128xf32> to vector<1x1x8x128xf32>
    tpu.vector_store %arg6[%c0_38, %c1_39, %c0_40, %c0_41], %58 {strides = array<i32>} : memref<1x2x8x128xf32, #tpu.memory_space<vmem>>, vector<1x1x8x128xf32>,
    return
  }
  func.func @transform_0(%arg0: i32, %arg1: i32) -> (i32, i32, i32, i32) {
    %c0_i32 = arith.constant 0 : i32
    %c0_i32_0 = arith.constant 0 : i32
    %c0_i32_1 = arith.constant 0 : i32
    return %arg0, %c0_i32, %arg1, %c0_i32_0 : i32, i32, i32, i32
  }
  func.func @transform_1(%arg0: i32, %arg1: i32) -> (i32, i32) {
    %c0_i32 = arith.constant 0 : i32
    %c0_i32_0 = arith.constant 0 : i32
    %c0_i32_1 = arith.constant 0 : i32
    return %c0_i32, %c0_i32_0 : i32, i32
  }
  func.func @transform_2(%arg0: i32, %arg1: i32) -> i32 {
    %c0_i32 = arith.constant 0 : i32
    %c0_i32_0 = arith.constant 0 : i32
    return %c0_i32 : i32
  }
  func.func @transform_3(%arg0: i32, %arg1: i32) -> (i32, i32) {
    %c0_i32 = arith.constant 0 : i32
    %c0_i32_0 = arith.constant 0 : i32
    %c0_i32_1 = arith.constant 0 : i32
    return %c0_i32, %c0_i32_0 : i32, i32
  }
  func.func @transform_4(%arg0: i32, %arg1: i32) -> (i32, i32, i32, i32) {
    %c0_i32 = arith.constant 0 : i32
    %c0_i32_0 = arith.constant 0 : i32
    %c0_i32_1 = arith.constant 0 : i32
    return %arg0, %c0_i32, %arg1, %c0_i32_0 : i32, i32, i32, i32
  }
}

</mosaic_0001>

<bundles_post_ra>
// kernel: tpu_custom_call.1
= control target key start
LH: loop header
LB: loop body
LE: loop exit
PB: predicated region body
PF: predicated region fallthrough
CT: control target
= control target key end

     0   :  { %9 = vsyncpa [#allocation3], 0  ;;  %s1183_s0 = inlined_call_operand.hbm [shape: f32[2,4,8,32], index: 0, kind: input, shape index: {}]   ;;  %s1184_s1 = inlined_call_operand.vmem [shape: f32[2,4], index: 1, kind: input, shape index: {}]   ;;  %s1185_s2 = inlined_call_operand.vmem [shape: f32[2], index: 2, kind: input, shape index: {}]   ;;  %s1186_s3 = inlined_call_operand.hbm [shape: f32[32,128], index: 3, kind: input, shape index: {}]   ;;  %s1187_s4 = inlined_call_operand.hbm [shape: f32[2,2,8,128], index: 4, kind: output, shape index: {}]  }
   0x1   :  { %11 = vsyncpa [#allocation3 + $0x1], 0 }
   0x2   :  { %12 = vsyncpa [#allocation5], 0 }
   0x3   :  { %13 = vsyncpa [#allocation8], 0 }
   0x4   :  { %14 = vsyncpa [#allocation10], 0 }
   0x5   :  { %15 = vsyncpa [#allocation4], 0 }
   0x6   :  { %17 = vsyncpa [#allocation4 + $0x1], 0  ;;  %s918_s15 = smov 0   ;;  %s920_s16 = smov 0  }
   0x7   :  { %s922_s17 = smov 0   ;;  %s924_s18 = smov 0  }
   0x8   :  { %s926_s19 = smov 0   ;;  %s928_s20 = smov 0  }
   0x9 LB: > { %s541_s21 = sadd.s32 4294967295, %s882_s20   ;;  %s542_s22 = sadd.s32 4294967294, %s882_s20   ;;  %s882_s20 = sphi %s928_s20, %s23_s20   ;;  %s878_s19 = sphi %s926_s19, %s1210_s19   ;;  %s874_s18 = sphi %s924_s18, %s1209_s18   ;;  %s870_s17 = sphi %s922_s17, %s1208_s17   ;;  %s866_s16 = sphi %s920_s16, %s1207_s16   ;;  %s862_s15 = sphi %s918_s15, %s1206_s15  }
   0xa   : > { %p57_p0 = scmp.ne.s32.totalorder %s866_s16, %s862_s15  ;;  %p952_p1 = scmp.eq.s32.totalorder %s541_s21, 0 }
   0xb   : > { %p956_p2 = scmp.eq.s32.totalorder %s541_s21, 1  ;;  %p152_p3 = scmp.eq.s32.totalorder %s542_s22, 1 }
   0xc   : > { %s1192_s23 = scalar_select %p952_p1, 1, 0 }
   0xd   : > { %s1193_s24 = scalar_select %p956_p2, 1, 0 }
   0xe   : > { %p962_p4 = por %p952_p1, %p57_p0  ;;  %p543_p5 = scmp.ge.s32.totalorder %s882_s20, 1 }
   0xf   : > { %p967_p6 = por %p152_p3, %p57_p0  ;;  %p159_p7 = scmp.lt.s32.totalorder %s882_s20, 3 }
  0x10   : > { %s1194_s25 = scalar_select %p962_p4, 1, 0 }
  0x11   : > { %s1195_s26 = scalar_select %p967_p6, 1, 0 }
  0x12   : > { %s172_s29 = sshll.u32 %s1184_s1, 4  ;;  %p975_p8 = pnand %p543_p5, %p159_p7  ;;  %s173_s29 = int_to_ptr.vmem [resolvable:$true] %s172_s29 }
  0x13   : > { %s183_s7 = sshll.u32 %s1185_s2, 4  ;;  %s884_s9 = smov [#allocation9]   ;;  %s184_s7 = int_to_ptr.vmem [resolvable:$true] %s183_s7 }
  0x14   : > { %s1196_s30 = scalar_select %p975_p8, 1, 0 }
  0x15   : > { %p619_p10 = pneg %p975_p8  ;;  %s193_s10 = sshll.u32 %s884_s9, 4  ;;  %s991_s10 = int_to_ptr.vmem [resolvable:$true] %s193_s10 }
  0x16   : > { %s700_s11 = scalar_lea.vmem %s173_s29, 32  ;;  %p708_p5 = scmp.lt.s32.totalorder %s173_s29, %s173_s29 }
  0x17   : > { %p987_p11 = pnand %p619_p10, %p952_p1  ;;  %p701_p12 = scmp.ne.s32.totalorder %s173_s29, %s700_s11 }
  0x18   : > { %p709_p7 = scmp.lt.s32.totalorder %s700_s11, %s700_s11 }
  0x19   : > { %p702_p13 = pneg %p987_p11 }
  0x1a   : > { %p710_p10 = por %p709_p7, %p708_p5 }
  0x1b   : > { %p703_p0 = pnand %p702_p13, %p701_p12 }
  0x1d   : > { %p704_p3 = pneg %p703_p0 }
  0x1f   : > { %p711_p9 = pnand %p710_p10, %p704_p3 }
  0x21   : > { %714 = shalt.err (!%p711_p9)
}
  0x22   : > { %s885_s12 = smov [#allocation6]   ;;  %s715_s13 = scalar_lea.vmem %s184_s7, 16 }
  0x23   : > { %622 = dma.vmem_to_smem (!%p987_p11), %s173_s29, 32, %s885_s12, [#allocation5]  }
  0x24   : > { %p716_p6 = scmp.ne.s32.totalorder %s184_s7, %s715_s13  ;;  %p723_p8 = scmp.lt.s32.totalorder %s184_s7, %s184_s7 }
  0x25   : > { %p724_p2 = scmp.lt.s32.totalorder %s715_s13, %s715_s13 }
  0x26   : > { %p718_p1 = pnand %p716_p6, %p702_p13 }
  0x27   : > { %p725_p12 = por %p724_p2, %p723_p8 }
  0x28   : > { %p719_p4 = pneg %p718_p1 }
  0x2a   : > { %p726_p0 = pnand %p725_p12, %p719_p4 }
  0x2c   : > { %729 = shalt.err (!%p726_p0)
}
  0x2d   : > { %s886_s14 = smov [#allocation7]   ;;  %s730_s27 = scalar_lea.hbm %s1186_s3, 512 }
  0x2e   : > { %625 = dma.vmem_to_smem (!%p987_p11), %s184_s7, 16, %s886_s14, [#allocation8]  }
  0x2f   : > { %p731_p9 = scmp.ne.s32.totalorder %s1186_s3, %s730_s27  ;;  %p737_p2 = scmp.lt.u32.totalorder %s730_s27, %s1186_s3 }
  0x31   : > { %p733_p1 = pnand %p731_p9, %p702_p13 }
  0x33   : > { %p734_p6 = pneg %p733_p1 }
  0x35   : > { %p739_p4 = pnand %p737_p2, %p734_p6 }
  0x37   : > { %742 = shalt.err (!%p739_p4)
}
  0x38   : > { %s743_s7 = scalar_lea.vmem %s991_s10, 512  ;;  %p751_p7 = scmp.lt.s32.totalorder %s991_s10, %s991_s10 }
  0x39   : > { %p744_p8 = scmp.ne.s32.totalorder %s991_s10, %s743_s7  ;;  %p752_p10 = scmp.lt.s32.totalorder %s743_s7, %s743_s7 }
  0x3b   : > { %p746_p3 = pnand %p744_p8, %p702_p13  ;;  %p753_p12 = por %p752_p10, %p751_p7 }
  0x3d   : > { %p747_p5 = pneg %p746_p3 }
  0x3f   : > { %p754_p0 = pnand %p753_p12, %p747_p5 }
  0x41   : > { %757 = shalt.err (!%p754_p0)
}
  0x42   : > { %s887_s9 = smov 128   ;;  %s888_s11 = smov 8  }
  0x43   : > { %628 = dma.hbm_to_vmem [thread:$0]  (!%p987_p11), %s1186_s3, 512, %s991_s10, [#allocation10], %s887_s9, %s887_s9, %s888_s11  }
  0x44   : > { %s44_s14 = sadd.s32 1, %s870_s17  ;;  %s35_s21 = sadd.s32 1, %s878_s19 }
  0x45   : > { %p51_p13 = scmp.ne.s32.totalorder %s870_s17, %s866_s16  ;;  %p37_p9 = scmp.ge.s32.totalorder %s35_s21, 2 }
  0x46   : > { %p52_p1 = scmp.eq.s32.totalorder %s882_s20, 0  ;;  %p1198_p6 = scmp.ne.s32.totalorder %s1193_s24, 0 }
  0x47   : > { %p640_p4 = scmp.lt.s32.totalorder %s882_s20, 2  ;;  %s1212_s21 = smov (%p37_p9, %s35_s21), 0 }
  0x48   : > { %p1040_p2 = por %p1198_p6, %p51_p13  ;;  %p53_p8 = por %p52_p1, %p51_p13 }
  0x49   : > { %s207_s8 = sand.u32 1, %s870_s17   ;;  %s39_s27 = ssub.s32 %s878_s19, %s1212_s21 }
  0x4a   : > { %p42_p3 = scmp.eq.s32.totalorder %s39_s27, 0  ;;  %s548_s10 = sshll.u32 %s207_s8, 5 }
  0x4b   : > { %s576_s28 = sshll.u32 %s878_s19, 9  ;;  %s211_s7 = scalar_lea.vmem [#allocation2], %s548_s10 }
  0x4c   : > { %s1052_s29 = scalar_select %p42_p3, %s870_s17, %s44_s14  }
  0x4d   : > { %s1057_s24 = scalar_lea.hbm %s1183_s0, %s576_s28  ;;  %s219_s12 = sshll.u32 %s211_s7, 4  ;;  %s1059_s12 = int_to_ptr.vmem [resolvable:$true] %s219_s12 }
  0x4e   : > { %p1063_p11 = pnand %p640_p4, %p53_p8  ;;  %s1067_s14 = scalar_lea.sflag [#allocation3], %s207_s8 }
  0x4f   : > { %s758_s27 = scalar_lea.hbm %s1057_s24, 512  ;;  %s763_s5 = scalar_lea.hbm %s1183_s0, 1024 }
  0x50   : > { %p759_p5 = scmp.ne.s32.totalorder %s1057_s24, %s758_s27  ;;  %p760_p7 = pneg %p1063_p11 }
  0x51   : > { %p764_p0 = scmp.lt.u32.totalorder %s1057_s24, %s1183_s0  ;;  %p765_p13 = scmp.lt.u32.totalorder %s763_s5, %s758_s27 }
  0x52   : > { %p761_p10 = pnand %p760_p7, %p759_p5  ;;  %p767_p1 = scmp.lt.u32.totalorder %s758_s27, %s1057_s24 }
  0x53   : > { %p766_p9 = por %p765_p13, %p764_p0 }
  0x54   : > { %p762_p12 = pneg %p761_p10 }
  0x55   : > { %p768_p6 = por %p767_p1, %p766_p9 }
  0x57   : > { %p769_p4 = pnand %p768_p6, %p762_p12 }
  0x59   : > { %772 = shalt.err (!%p769_p4)
}
  0x5a   : > { %s773_s8 = scalar_lea.vmem %s1059_s12, 512  ;;  %s889_s10 = smov [#allocation2]  }
  0x5b   : > { %p774_p8 = scmp.ne.s32.totalorder %s1059_s12, %s773_s8  ;;  %s778_s28 = sshll.u32 %s889_s10, 4  ;;  %s779_s28 = int_to_ptr.vmem [resolvable:$false] %s778_s28 }
  0x5c   : > { %s780_s6 = scalar_lea.vmem %s779_s28, 1024  ;;  %p781_p10 = scmp.lt.s32.totalorder %s1059_s12, %s779_s28 }
  0x5d   : > { %p776_p3 = pnand %p774_p8, %p760_p7  ;;  %p782_p0 = scmp.lt.s32.totalorder %s780_s6, %s773_s8 }
  0x5f   : > { %p777_p5 = pneg %p776_p3  ;;  %p783_p13 = por %p782_p0, %p781_p10 }
  0x61   : > { %p784_p9 = pnand %p783_p13, %p777_p5 }
  0x63   : > { %787 = shalt.err (!%p784_p9)
}
  0x64   : > { %632 = dma.hbm_to_vmem [thread:$0]  (!%p1063_p11), %s1057_s24, 512, %s1059_s12, %s1067_s14, %s887_s9, %s887_s9, %s888_s11  }
  0x65   : > { %p1201_p7 = scmp.ne.s32.totalorder %s1196_s30, 0 }
  0x66   : > { %s1101_s27 = sand.u32 (!%p1201_p7), 1, %s866_s16   ;;  %p1202_p12 = scmp.ne.s32.totalorder (!%p1201_p7), %s1194_s25, 0 }
  0x67   : > { %231 = sbr.rel (%p1201_p7) target bundleno = 366 (0x16e), region = 36  ;;  %s552_s5 = sshll.u32 (!%p1201_p7), %s1101_s27, 5 }
  0x68   : > { %s234_s7 = scalar_lea.sflag (!%p1201_p7), [#allocation3], %s1101_s27  ;;  %s1105_s8 = scalar_lea.vmem (!%p1201_p7), [#allocation2], %s552_s5 }
  0x6e   : > { %841 = dma.done.wait (%p1202_p12), %s234_s7, 512  }
  0x6f   : > { %843 = vsyncadd (%p1202_p12), %s234_s7, 4294966784  ;;  %p1203_p11 = scmp.ne.s32.totalorder %s1192_s23, 0 }
  0x71   : > { %845 = dma.done.wait (%p1203_p11), [#allocation5], 32  }
  0x72   : > { %847 = vsyncadd (%p1203_p11), [#allocation5], 4294967264 }
  0x73   : > { %849 = dma.done.wait (%p1203_p11), [#allocation8], 16  }
  0x74   : > { %851 = vsyncadd (%p1203_p11), [#allocation8], 4294967280 }
  0x75   : > { %853 = dma.done.wait (%p1203_p11), [#allocation10], 512  }
  0x76   : > { %855 = vsyncadd (%p1203_p11), [#allocation10], 4294966784 }
  0x77   : > { %254 = sfence }
  0x78   : > { %v320_v0 = vld [vmem:[#allocation9] sm:$0xff]  ;;  %v321_v1 = vld [vmem:[#allocation9 + $0x8] sm:$0xff]  ;;  %v322_v2 = vld [vmem:[#allocation9 + $0x10] sm:$0xff]  ;;  %s276_s25 = sld [smem:[#allocation6]]  ;;  %s559_s9 = sld [smem:[#allocation6 + $0x1]]  ;;  %vm324_vm0 = vcmask 261120  }
  0x79   : > { %v595_v3 = vpack.c.bf16 %v321_v1, %v320_v0  ;;  %v323_v4 = vld [vmem:[#allocation9 + $0x18] sm:$0xff]  ;;  %s557_s30 = sld [smem:[#allocation6 + $0x80]]  ;;  %s560_s11 = sld [smem:[#allocation6 + $0x81]]  ;;  %v275_v6 = vld [vmem:[%s1105_s8] sm:$0xff]  ;;  %v558_v8 = vld [vmem:[%s1105_s8 + $0x8] sm:$0xff] }
  0x7a   : > { %v599_v5 = vpack.c.bf16 %v323_v4, %v322_v2  ;;  %s562_s24 = sld [smem:[#allocation6 + $0x2]]  ;;  %s565_s23 = sld [smem:[#allocation6 + $0x3]]  ;;  %v561_v11 = vld [vmem:[%s1105_s8 + $0x10] sm:$0xff]  ;;  %v564_v15 = vld [vmem:[%s1105_s8 + $0x18] sm:$0xff] }
  0x7b   : > { %596 = vmatprep.subr.bf16.mxu0 %v595_v3  ;;  %s563_s12 = sld [smem:[#allocation6 + $0x82]]  ;;  %s566_s13 = sld [smem:[#allocation6 + $0x83]] }
  0x7c   : > { %598 = vmatpush3.bf16.msra.mxu0 %v595_v3  ;;  %s314_s14 = sld [smem:[#allocation7]]  ;;  %s567_s10 = sld [smem:[#allocation7 + $0x1]] }
  0x7d   : > { %600 = vmatprep.subr.bf16.mxu0 %v599_v5  ;;  %s556_s28 = sshll.u32 %s1101_s27, 4  ;;  %s577_s7 = sshll.u32 %s874_s18, 8 }
  0x7e   : > { %v277_v7 = vstv %s276_s25  ;;  %v287_v13 = vstv %s559_s9  ;;  %s274_s6 = scalar_lea.vmem [#allocation11], %s556_s28  ;;  %s410_s9 = scalar_lea.sflag [#allocation4], %s1101_s27 }
  0x7f   : > { %v278_v9 = vmul.f32 %v277_v7, %v275_v6  ;;  %v281_v10 = vstv %s557_s30  ;;  %v291_v14 = vstv %s560_s11  ;;  %v288_v16 = vmul.f32 %v558_v8, %v287_v13  ;;  %s424_s5 = sshll.u32 %s274_s6, 4  ;;  %s1134_s30 = scalar_lea.hbm %s1187_s4, %s577_s7  ;;  %s1129_s5 = int_to_ptr.vmem [resolvable:$true] %s424_s5 }
  0x80   : > { %602 = vmatpush3.bf16.msra.mxu0 %v599_v5  ;;  %v282_v12 = vmul.f32 %v281_v10, %v275_v6  ;;  %v292_v17 = vmul.f32 %v558_v8, %v291_v14  ;;  %v297_v18 = vstv %s562_s24  ;;  %v307_v22 = vstv %s565_s23  ;;  %s788_s11 = scalar_lea.vmem %s1129_s5, 256  ;;  %s890_s18 = smov [#allocation11]  }
  0x81   : > { %v301_v19 = vstv %s563_s12  ;;  %v298_v20 = vmul.f32 %v561_v11, %v297_v18  ;;  %v311_v23 = vstv %s566_s13  ;;  %v289_v24 = vadd.f32 %v288_v16, %v278_v9  ;;  %p789_p1 = scmp.ne.s32.totalorder %s1129_s5, %s788_s11  ;;  %s792_s24 = sshll.u32 %s890_s18, 4  ;;  %s793_s24 = int_to_ptr.vmem [resolvable:$false] %s792_s24 }
  0x82   : > { %v302_v21 = vmul.f32 %v561_v11, %v301_v19  ;;  %v308_v25 = vmul.f32 %v564_v15, %v307_v22  ;;  %v312_v26 = vmul.f32 %v564_v15, %v311_v23  ;;  %v293_v27 = vadd.f32 %v292_v17, %v282_v12  ;;  %s794_s12 = scalar_lea.vmem %s793_s24, 512  ;;  %p795_p8 = scmp.lt.s32.totalorder %s1129_s5, %s793_s24 }
  0x83   : > { %v299_v28 = vadd.f32 %v298_v20, %v289_v24  ;;  %v315_v29 = vstv %s314_s14  ;;  %v318_v32 = vstv %s567_s10  ;;  %p790_p6 = pnand %p789_p1, %p1040_p2  ;;  %p796_p3 = scmp.lt.s32.totalorder %s794_s12, %s788_s11 }
  0x84   : > { %v303_v30 = vadd.f32 %v302_v21, %v293_v27 }
  0x85   : > { %v309_v31 = vadd.f32 %v308_v25, %v299_v28  ;;  %p791_p4 = pneg %p790_p6  ;;  %p797_p5 = por %p796_p3, %p795_p8 }
  0x86   : > { %v313_v33 = vadd.f32 %v312_v26, %v303_v30 }
  0x87   : > { %v316_v34 = vadd.f32 %v315_v29, %v309_v31  ;;  %p798_p10 = pnand %p797_p5, %p791_p4 }
  0x88   : > { %v319_v35 = vadd.f32 %v318_v32, %v313_v33 }
  0x89   : > { %592 = vmatprep.mubr.msk.f32.mxu0 %vm324_vm0, %v316_v34 }
  0x8a   : > { %593 = vmatmul.mubr.msk.f32.vlgmr.msra.gmra.mrb[0].mxu0 %vm324_vm0, %v319_v35 }
 0x15d   : > { %v594_v36 = vpop.f32.mrb[0].mxu0 }
 0x15e   : > { %570 = vst [vmem:[%s274_s6 + $0x8] sm:$0xff] %v594_v36  ;;  %v397_v37 = vpop.f32.mrb[1].mxu0 }
 0x15f   : > { %406 = vst [vmem:[%s274_s6] sm:$0xff] %v397_v37 }
 0x160   : > { %801 = shalt.err (!%p798_p10)
}
 0x161   : > { %s802_s23 = scalar_lea.hbm %s1134_s30, 256  ;;  %s806_s10 = scalar_lea.hbm %s1187_s4, 512 }
 0x162   : > { %p803_p0 = scmp.ne.s32.totalorder %s1134_s30, %s802_s23  ;;  %p807_p7 = scmp.lt.u32.totalorder %s1134_s30, %s1187_s4 }
 0x163   : > { %p808_p12 = scmp.lt.u32.totalorder %s806_s10, %s802_s23  ;;  %p810_p1 = scmp.lt.u32.totalorder %s802_s23, %s1134_s30 }
 0x164   : > { %p804_p13 = pnand %p803_p0, %p1040_p2 }
 0x165   : > { %p809_p11 = por %p808_p12, %p807_p7 }
 0x166   : > { %p805_p9 = pneg %p804_p13 }
 0x167   : > { %p811_p6 = por %p810_p1, %p809_p11 }
 0x169   : > { %p812_p4 = pnand %p811_p6, %p805_p9 }
 0x16b   : > { %815 = shalt.err (!%p812_p4)
}
 0x16c   : > { %s891_s7 = smov 128   ;;  %s892_s8 = smov 8  }
 0x16d   : > { %617 = dma.vmem_to_hbm [thread:$0]  (%p1040_p2), %s1129_s5, 256, %s1134_s30, %s410_s9, %s891_s7, %s891_s7, %s892_s8  }
 0x16e PF: > { %s439_s25 = sand.u32 1, %s862_s15   ;;  %p1204_p8 = scmp.ne.s32.totalorder %s1195_s26, 0 }
 0x16f   : > { %p1205_p3 = scmp.ge.s32.totalorder %s882_s20, 2  ;;  %s440_s11 = scalar_lea.sflag [#allocation4], %s439_s25 }
 0x171   : > { %p634_p5 = pnand %p1205_p3, %p1204_p8 }
 0x173   : > { %857 = dma.done.wait (!%p634_p5), %s440_s11, 256  }
 0x174   : > { %859 = vsyncadd (!%p634_p5), %s440_s11, 4294967040  ;;  %s23_s20 = sadd.s32 1, %s882_s20   ;;  %s1206_s15 = smov %s866_s16 }
 0x175   : > { %p20_p10 = scmp.ge.s32.totalorder %s23_s20, 4   ;;  %s1207_s16 = smov %s870_s17 }
 0x176   : > { %s1208_s17 = smov %s1052_s29  ;;  %s1209_s18 = smov %s878_s19 }
 0x177   : > { %s1210_s19 = smov %s1212_s21  ;;  %22 = sbr.rel (!%p20_p10) target bundleno = 9 (0x9), region = 98 }
 0x17e   :  { %445 = vsyncpa [#allocation3], 1 }
 0x17f   :  { %447 = vsyncpa [#allocation3 + $0x1], 1 }
 0x180   :  { %448 = vsyncpa [#allocation10], 1 }
 0x181   :  { %449 = vsyncpa [#allocation4], 1 }
 0x182   :  { %451 = vsyncpa [#allocation4 + $0x1], 1 }
 0x183   :  { %452 = vsyncpa [#allocation5], 1 }
 0x184   :  { %454 = vsyncpa [#allocation5 + $0x1], 1 }
 0x185   :  { %455 = vsyncpa [#allocation8], 1 }

</bundles_post_ra>
